<compile_context>
chip_gen: v5e
topology: v5e:2x2
jax: 0.10.0
libtpu: 0.0.40
codegen_flags: <defaults>
</compile_context>

<pallas_src>
import functools

import jax
import jax.numpy as jnp
from jax import lax
from jax.experimental import pallas as pl
from jax.experimental.pallas import tpu as pltpu

LANES = 128
SUBLANES = 8
CHUNK_ROWS = 256        # rows per inner accumulation step (32 vregs / f32 temp)
MAX_ROW_TILE = 4096     # 2 MiB f32 per input tile -> ~12 MiB VMEM double-buffered


def _round_up(x, m):
    return (x + m - 1) // m * m


def _masked_l1_kernel(preds_ref, y_ref, u_ref, out_ref, *, valid_rows, needs_mask):
    """Writes per-block partial sums: out_ref[0,0]=sum|mask*diff|, out_ref[0,1]=sum mask."""
    rt = preds_ref.shape[0]  # static row-tile size (multiple of 8)
    chunk = CHUNK_ROWS if (rt > CHUNK_ROWS and rt % CHUNK_ROWS == 0) else rt
    n_chunks = rt // chunk
    block_row0 = pl.program_id(0) * rt

    def chunk_sums(start, num_acc, den_acc):
        p = preds_ref[pl.ds(start, chunk), :].astype(jnp.float32)
        t = y_ref[pl.ds(start, chunk), :].astype(jnp.float32)
        u = u_ref[pl.ds(start, chunk), :].astype(jnp.float32)
        m = 1.0 - u
        # Keep abs(mask * diff) (not mask * abs(diff)) to match PyTorch exactly
        # even for non-binary u_out.
        c = jnp.abs(m * (t - p))
        if needs_mask:
            # Only compiled in when the last block is ragged: zero out rows at
            # or past `valid_rows` (they hold unspecified block-padding data).
            rid = (block_row0 + start
                   + lax.broadcasted_iota(jnp.int32, (chunk, LANES), 0))
            valid = rid < valid_rows
            c = jnp.where(valid, c, 0.0)
            m = jnp.where(valid, m, 0.0)
        # vreg-tile aligned reshape -> pure VPU adds (no cross-lane XLU work).
        num_acc = num_acc + jnp.sum(
            c.reshape(chunk // SUBLANES, SUBLANES, LANES), axis=0)
        den_acc = den_acc + jnp.sum(
            m.reshape(chunk // SUBLANES, SUBLANES, LANES), axis=0)
        return num_acc, den_acc

    zero = jnp.zeros((SUBLANES, LANES), jnp.float32)
    if n_chunks == 1:
        num_acc, den_acc = chunk_sums(0, zero, zero)
    else:
        def body(ci, carry):
            start = pl.multiple_of(ci * chunk, chunk)
            return chunk_sums(start, *carry)
        num_acc, den_acc = lax.fori_loop(0, n_chunks, body, (zero, zero))

    out_ref[0, 0, :, :] = num_acc
    out_ref[0, 1, :, :] = den_acc


def l1_loss_masked(preds, y, u_out):
    """Masked L1 loss. preds, y, u_out: same shape, any rank, any real dtype."""
    n = preds.size
    # Lane padding only (to a multiple of 128).  Zero-copy whenever
    # numel % 128 == 0; padded mask elements use u=1 -> mask=0 -> contribute 0.
    pad = (-n) % LANES
    rows = (n + pad) // LANES

    def _prep(x, pad_value):
        flat = x.reshape(-1)
        if pad:
            # TODO(synk): this copy only triggers when numel % 128 != 0; a fully
            # copy-free path would need a 1D / ANY-memory-space manual-DMA input.
            flat = jnp.pad(flat, (0, pad), constant_values=pad_value)
        return flat.reshape(rows, LANES)

    preds2d = _prep(preds, 0)
    y2d = _prep(y, 0)
    u2d = _prep(u_out, 1)

    # Row-tile selection:
    #  * >= 2 blocks (even count when cheap) so v7x megacore can split the grid,
    #  * tiles aligned to CHUNK_ROWS for clean in-kernel chunked accumulation,
    #  * capped at MAX_ROW_TILE to stay inside default scoped VMEM everywhere.
    align = CHUNK_ROWS if rows > 2 * CHUNK_ROWS else SUBLANES
    nb = pl.cdiv(rows, MAX_ROW_TILE)
    if rows >= 2 * SUBLANES:
        nb = max(nb, 2)
        if nb % 2:
            nb += 1
    row_tile = min(MAX_ROW_TILE, _round_up(pl.cdiv(rows, nb), align))
    num_blocks = pl.cdiv(rows, row_tile)
    needs_mask = (rows % row_tile) != 0

    in_spec = pl.BlockSpec((row_tile, LANES), lambda i: (i, 0))
    out_spec = pl.BlockSpec((1, 2, SUBLANES, LANES), lambda i: (i, 0, 0, 0))

    kernel = functools.partial(
        _masked_l1_kernel, valid_rows=rows, needs_mask=needs_mask)

    bytes_in = rows * LANES * (preds.dtype.itemsize + y.dtype.itemsize
                               + u_out.dtype.itemsize)
    bytes_out = num_blocks * 2 * SUBLANES * LANES * 4
    cost = pl.CostEstimate(flops=6 * rows * LANES, transcendentals=0,
                           bytes_accessed=bytes_in + bytes_out)

    parts = pl.pallas_call(
        kernel,
        out_shape=jax.ShapeDtypeStruct((num_blocks, 2, SUBLANES, LANES),
                                       jnp.float32),
        grid_spec=pltpu.PrefetchScalarGridSpec(
            num_scalar_prefetch=0,
            grid=(num_blocks,),
            in_specs=[in_spec, in_spec, in_spec],
            out_specs=out_spec,
        ),
        compiler_params=pltpu.CompilerParams(
            dimension_semantics=("parallel",),
        ),
        cost_estimate=cost,
    )(preds2d, y2d, u2d)

    # Tiny final reduction + divide (a few KiB) done in plain JAX.
    # Note: sum(mask) == 0 yields NaN/Inf, matching PyTorch.
    totals = jnp.sum(parts, axis=(0, 2, 3))  # (2,) = [sum |mask*diff|, sum mask]
    return totals[0] / totals[1]


def _reference(preds, y, u_out):
    mask = 1.0 - u_out
    return jnp.sum(jnp.abs(mask * (y - preds))) / jnp.sum(mask)


if __name__ == "__main__":
    key = jax.random.PRNGKey(0)

    # Case 1: small NCHW-shaped inputs (2048 elems -> zero-copy, 2 blocks).
    # Case 2: larger input exercising the chunked fori_loop accumulation path.
    # Case 3: ragged size (231 elems) exercising lane-pad + in-kernel row mask.
    shapes = [(2, 4, 16, 16), (16, 8, 16, 128), (3, 7, 11)]

    ok = True
    for shape in shapes:
        key, k1, k2, k3 = jax.random.split(key, 4)
        preds = jax.random.normal(k1, shape, dtype=jnp.float32)
        y = jax.random.normal(k2, shape, dtype=jnp.float32)
        # u_out is a binary indicator (as in the ventilator-pressure setup).
        u_out = (jax.random.uniform(k3, shape) > 0.5).astype(jnp.float32)

        loss = jax.block_until_ready(l1_loss_masked(preds, y, u_out))
        ref = _reference(preds, y, u_out)
        if not jnp.allclose(loss, ref, rtol=1e-5, atol=1e-6):
            ok = False
            print("MISMATCH", shape, float(loss), float(ref))

    if ok:
        print("KERNEL_OK")
</pallas_src>

<mosaic_0001>
module attributes {stable_mosaic.version = 11 : i64} {
  func.func @_masked_l1_kernel(%arg0: i32, %arg1: memref<8x128xf32, #tpu.memory_space<vmem>>, %arg2: memref<8x128xf32, #tpu.memory_space<vmem>>, %arg3: memref<8x128xf32, #tpu.memory_space<vmem>>, %arg4: memref<1x2x8x128xf32, #tpu.memory_space<vmem>>) attributes {dimension_semantics = [#tpu.dimension_semantics<parallel>], iteration_bounds = array<i64: 2>, scalar_prefetch = 0 : i64, scratch_operands = 0 : i64, tpu.core_type = #tpu.core_type<tc>, window_params = [{transform_indices = @transform_0, window_bounds = array<i64: 8, 128>}, {transform_indices = @transform_1, window_bounds = array<i64: 8, 128>}, {transform_indices = @transform_2, window_bounds = array<i64: 8, 128>}, {transform_indices = @transform_3, window_bounds = array<i64: 1, 2, 8, 128>}]} {
    %cst = arith.constant 0.000000e+00 : f32
    %0 = vector.broadcast %cst : f32 to vector<8x128xf32>
    %c0 = arith.constant 0 : index
    %c0_0 = arith.constant 0 : index
    %1 = vector.load %arg1[%c0, %c0_0] : memref<8x128xf32, #tpu.memory_space<vmem>>, vector<8x128xf32>
    %c0_1 = arith.constant 0 : index
    %c0_2 = arith.constant 0 : index
    %2 = vector.load %arg2[%c0_1, %c0_2] : memref<8x128xf32, #tpu.memory_space<vmem>>, vector<8x128xf32>
    %c0_3 = arith.constant 0 : index
    %c0_4 = arith.constant 0 : index
    %3 = vector.load %arg3[%c0_3, %c0_4] : memref<8x128xf32, #tpu.memory_space<vmem>>, vector<8x128xf32>
    %cst_5 = arith.constant 1.000000e+00 : f32
    %4 = vector.broadcast %cst_5 : f32 to vector<8x128xf32>
    %5 = arith.subf %4, %3 : vector<8x128xf32>
    %6 = arith.subf %2, %1 : vector<8x128xf32>
    %7 = arith.mulf %5, %6 : vector<8x128xf32>
    %8 = math.absf %7 : vector<8x128xf32>
    %9 = vector.shape_cast %8 : vector<8x128xf32> to vector<1x8x128xf32>
    %cst_6 = arith.constant dense<0.000000e+00> : vector<8x128xf32>
    %10 = vector.multi_reduction <add>, %9, %cst_6 [0] : vector<1x8x128xf32> to vector<8x128xf32>
    %11 = arith.addf %0, %10 : vector<8x128xf32>
    %12 = vector.shape_cast %5 : vector<8x128xf32> to vector<1x8x128xf32>
    %cst_7 = arith.constant dense<0.000000e+00> : vector<8x128xf32>
    %13 = vector.multi_reduction <add>, %12, %cst_7 [0] : vector<1x8x128xf32> to vector<8x128xf32>
    %14 = arith.addf %0, %13 : vector<8x128xf32>
    %c0_8 = arith.constant 0 : index
    %c0_9 = arith.constant 0 : index
    %c0_10 = arith.constant 0 : index
    %c0_11 = arith.constant 0 : index
    %15 = vector.load %arg4[%c0_8, %c0_9, %c0_10, %c0_11] : memref<1x2x8x128xf32, #tpu.memory_space<vmem>>, vector<1x1x8x128xf32>
    %16 = vector.shape_cast %15 : vector<1x1x8x128xf32> to vector<8x128xf32>
    %17 = vector.shape_cast %11 : vector<8x128xf32> to vector<1x1x8x128xf32>
    tpu.vector_store %arg4[%c0_8, %c0_9, %c0_10, %c0_11], %17 {strides = array<i32>} : memref<1x2x8x128xf32, #tpu.memory_space<vmem>>, vector<1x1x8x128xf32>,
    %c0_12 = arith.constant 0 : index
    %c1 = arith.constant 1 : index
    %c0_13 = arith.constant 0 : index
    %c0_14 = arith.constant 0 : index
    %18 = vector.load %arg4[%c0_12, %c1, %c0_13, %c0_14] : memref<1x2x8x128xf32, #tpu.memory_space<vmem>>, vector<1x1x8x128xf32>
    %19 = vector.shape_cast %18 : vector<1x1x8x128xf32> to vector<8x128xf32>
    %20 = vector.shape_cast %14 : vector<8x128xf32> to vector<1x1x8x128xf32>
    tpu.vector_store %arg4[%c0_12, %c1, %c0_13, %c0_14], %20 {strides = array<i32>} : memref<1x2x8x128xf32, #tpu.memory_space<vmem>>, vector<1x1x8x128xf32>,
    return
  }
  func.func @transform_0(%arg0: i32) -> (i32, i32) {
    %c0_i32 = arith.constant 0 : i32
    %c0_i32_0 = arith.constant 0 : i32
    return %arg0, %c0_i32 : i32, i32
  }
  func.func @transform_1(%arg0: i32) -> (i32, i32) {
    %c0_i32 = arith.constant 0 : i32
    %c0_i32_0 = arith.constant 0 : i32
    return %arg0, %c0_i32 : i32, i32
  }
  func.func @transform_2(%arg0: i32) -> (i32, i32) {
    %c0_i32 = arith.constant 0 : i32
    %c0_i32_0 = arith.constant 0 : i32
    return %arg0, %c0_i32 : i32, i32
  }
  func.func @transform_3(%arg0: i32) -> (i32, i32, i32, i32) {
    %c0_i32 = arith.constant 0 : i32
    %c0_i32_0 = arith.constant 0 : i32
    %c0_i32_1 = arith.constant 0 : i32
    %c0_i32_2 = arith.constant 0 : i32
    return %arg0, %c0_i32, %c0_i32_0, %c0_i32_1 : i32, i32, i32, i32
  }
}

</mosaic_0001>

<bundles_post_ra>
// kernel: tpu_custom_call.1
= control target key start
LH: loop header
LB: loop body
LE: loop exit
PB: predicated region body
PF: predicated region fallthrough
CT: control target
= control target key end

     0   :  { %s853_s0 = inlined_call_operand.hbm [shape: f32[16,128], index: 0, kind: input, shape index: {}]   ;;  %s854_s1 = inlined_call_operand.hbm [shape: f32[16,128], index: 1, kind: input, shape index: {}]   ;;  %s855_s2 = inlined_call_operand.hbm [shape: f32[16,128], index: 2, kind: input, shape index: {}]   ;;  %s856_s3 = inlined_call_operand.hbm [shape: f32[2,2,8,128], index: 3, kind: output, shape index: {}]  }
   0x1   :  { %857 = sst [smem:[#allocation13_spill]] %s854_s1 }
   0x2   :  { %8 = vsyncpa [#allocation3], 0 }
   0x3   :  { %10 = vsyncpa [#allocation3 + $0x1], 0 }
   0x4   :  { %11 = vsyncpa [#allocation6], 0 }
   0x5   :  { %13 = vsyncpa [#allocation6 + $0x1], 0 }
   0x6   :  { %14 = vsyncpa [#allocation4], 0 }
   0x7   :  { %16 = vsyncpa [#allocation4 + $0x1], 0  ;;  %s672_s12 = smov 0   ;;  %s674_s13 = smov 0  }
   0x8   :  { %s676_s14 = smov 0   ;;  %s678_s15 = smov 0  }
   0x9 LB: > { %s693_s16 = sadd.s32 4294967295, %s648_s15   ;;  %s409_s17 = sadd.s32 4294967294, %s648_s15   ;;  %s648_s15 = sphi %s678_s15, %s869_s15   ;;  %s644_s14 = sphi %s676_s14, %s868_s14   ;;  %s640_s13 = sphi %s674_s13, %s867_s13   ;;  %s636_s12 = sphi %s672_s12, %s866_s12  }
   0xa   : > { %s697_s18 = sadd.s32 1, %s648_s15   ;;  %s29_s19 = sadd.s32 1, %s644_s14 }
   0xb   : > { %s26_s20 = ssub.s32 %s648_s15, %s697_s18  ;;  %p36_p0 = scmp.ne.s32.totalorder %s644_s14, %s640_s13 }
   0xc   : > { %p27_p1 = scmp.eq.s32.totalorder %s26_s20, 0  ;;  %p37_p2 = scmp.eq.s32.totalorder %s648_s15, 0 }
   0xd   : > { %p42_p3 = scmp.ne.s32.totalorder %s640_s13, %s636_s12  ;;  %p43_p4 = scmp.eq.s32.totalorder %s693_s16, 0 }
   0xe   : > { %s709_s21 = scalar_select %p27_p1, %s644_s14, %s29_s19  }
   0xf   : > { %p38_p5 = por %p37_p2, %p36_p0  ;;  %p711_p6 = por %p43_p4, %p42_p3 }
  0x10   : > { %858 = sst [smem:[#allocation12_spill]] %s709_s21  ;;  %p118_p7 = scmp.eq.s32.totalorder %s693_s16, 1 }
  0x11   : > { %p124_p8 = scmp.eq.s32.totalorder %s409_s17, 1  ;;  %p411_p9 = scmp.ge.s32.totalorder %s648_s15, 2 }
  0x12   : > { %p452_p10 = scmp.lt.s32.totalorder %s648_s15, 2  ;;  %p718_p11 = por %p118_p7, %p36_p0 }
  0x13   : > { %p722_p12 = por %p124_p8, %p42_p3  ;;  %s144_s25 = sand.u32 1, %s644_s14  }
  0x14   : > { %s728_s26 = sshll.u32 %s648_s15, 3  ;;  %s732_s27 = sshll.u32 %s144_s25, 3 }
  0x15   : > { %p734_p13 = pnand %p452_p10, %p38_p5  ;;  %s163_s29 = sand.u32 1, %s648_s15  }
  0x16   : > { %s863_s1 = sld [smem:[#allocation13_spill]]  ;;  %s167_s6 = scalar_lea.vmem [#allocation5], %s732_s27 }
  0x17   : > { %s175_s7 = sshll.u32 %s167_s6, 4  ;;  %p418_p0 = scmp.ge.s32.totalorder %s648_s15, 1  ;;  %s176_s7 = int_to_ptr.vmem [resolvable:$true] %s175_s7 }
  0x18   : > { %s745_s9 = scalar_lea.sflag [#allocation6], %s163_s29  ;;  %p492_p2 = pneg %p734_p13 }
  0x1c   : > { %s171_s5 = scalar_lea.hbm %s863_s1, %s728_s26  ;;  %s495_s20 = scalar_lea.hbm %s863_s1, 16 }
  0x1d   : > { %s173_s8 = sshll.u32 %s171_s5, 4  ;;  %s174_s8 = int_to_ptr.hbm [resolvable:$true] %s173_s8 }
  0x1e   : > { %s488_s10 = sshra.s32 %s174_s8, 4  ;;  %s489_s10 = int_to_ptr.hbm [resolvable:$true] %s488_s10 }
  0x1f   : > { %s490_s11 = scalar_lea.hbm %s489_s10, 8  ;;  %p496_p5 = scmp.lt.s32.totalorder %s489_s10, %s863_s1 }
  0x20   : > { %p491_p1 = scmp.ne.s32.totalorder %s489_s10, %s490_s11  ;;  %p497_p7 = scmp.lt.s32.totalorder %s495_s20, %s490_s11 }
  0x22   : > { %p493_p3 = pnand %p492_p2, %p491_p1  ;;  %p498_p8 = por %p497_p7, %p496_p5 }
  0x24   : > { %p494_p4 = pneg %p493_p3 }
  0x26   : > { %p499_p10 = pnand %p498_p8, %p494_p4 }
  0x28   : > { %502 = shalt.err (!%p499_p10)
}
  0x29   : > { %444 = dma.hbm_to_vmem [thread:$0]  (!%p734_p13), %s174_s8, 128, %s176_s7, %s745_s9  }
  0x2a   : > { %p199_p1 = scmp.lt.s32.totalorder %s648_s15, 3  ;;  %s152_s6 = scalar_lea.hbm %s853_s0, %s728_s26 }
  0x2b   : > { %s154_s11 = sshll.u32 %s152_s6, 4  ;;  %s148_s17 = scalar_lea.vmem [#allocation2], %s732_s27  ;;  %s155_s11 = int_to_ptr.hbm [resolvable:$true] %s154_s11 }
  0x2c   : > { %p768_p3 = pnand %p418_p0, %p199_p1  ;;  %s156_s19 = sshll.u32 %s148_s17, 4  ;;  %s157_s19 = int_to_ptr.vmem [resolvable:$true] %s156_s19 }
  0x2d   : > { %s145_s20 = scalar_lea.sflag [#allocation3], %s144_s25  ;;  %s518_s30 = sshra.s32 %s155_s11, 4  ;;  %s519_s30 = int_to_ptr.hbm [resolvable:$true] %s518_s30 }
  0x2e   : > { %s520_s7 = scalar_lea.hbm %s519_s30, 8  ;;  %s525_s29 = scalar_lea.hbm %s853_s0, 16 }
  0x2f   : > { %p521_p4 = scmp.ne.s32.totalorder %s519_s30, %s520_s7  ;;  %p526_p0 = scmp.lt.s32.totalorder %s519_s30, %s853_s0 }
  0x30   : > { %p527_p8 = scmp.lt.s32.totalorder %s525_s29, %s520_s7 }
  0x31   : > { %p523_p5 = pnand %p521_p4, %p492_p2 }
  0x32   : > { %p528_p10 = por %p527_p8, %p526_p0 }
  0x33   : > { %p524_p7 = pneg %p523_p5 }
  0x35   : > { %p529_p1 = pnand %p528_p10, %p524_p7 }
  0x37   : > { %532 = shalt.err (!%p529_p1)
}
  0x38   : > { %441 = dma.hbm_to_vmem [thread:$0]  (!%p734_p13), %s155_s11, 128, %s157_s19, %s145_s20  }
  0x39   : > { %s190_s1 = scalar_lea.hbm %s855_s2, %s728_s26  ;;  %s186_s8 = scalar_lea.vmem [#allocation7], %s732_s27 }
  0x3a   : > { %s194_s4 = sshll.u32 %s186_s8, 4  ;;  %s192_s21 = sshll.u32 %s190_s1, 4  ;;  %s195_s4 = int_to_ptr.vmem [resolvable:$true] %s194_s4  ;;  %s193_s21 = int_to_ptr.hbm [resolvable:$true] %s192_s21 }
  0x3b   : > { %s548_s30 = sshra.s32 %s193_s21, 4  ;;  %s555_s11 = scalar_lea.hbm %s855_s2, 16  ;;  %s549_s30 = int_to_ptr.hbm [resolvable:$true] %s548_s30 }
  0x3c   : > { %s550_s7 = scalar_lea.hbm %s549_s30, 8  ;;  %p556_p0 = scmp.lt.s32.totalorder %s549_s30, %s855_s2 }
  0x3d   : > { %p551_p4 = scmp.ne.s32.totalorder %s549_s30, %s550_s7  ;;  %p557_p8 = scmp.lt.s32.totalorder %s555_s11, %s550_s7 }
  0x3f   : > { %p553_p5 = pnand %p551_p4, %p492_p2  ;;  %p558_p10 = por %p557_p8, %p556_p0 }
  0x41   : > { %p554_p7 = pneg %p553_p5 }
  0x43   : > { %p559_p1 = pnand %p558_p10, %p554_p7 }
  0x45   : > { %562 = shalt.err (!%p559_p1)
}
  0x46   : > { %447 = dma.hbm_to_vmem [thread:$0]  (!%p734_p13), %s193_s21, 128, %s195_s4, %s745_s9  }
  0x47   : > { %203 = sbr.rel (%p768_p3) target bundleno = 97 (0x61), region = 32  ;;  %s806_s1 = sand.u32 (!%p768_p3), 1, %s640_s13  }
  0x48   : > { %s419_s26 = sshll.u32 (!%p768_p3), %s806_s1, 3  ;;  %s206_s27 = scalar_lea.sflag (!%p768_p3), [#allocation3], %s806_s1 }
  0x49   : > { %s209_s6 = scalar_lea.vmem (!%p768_p3), [#allocation2], %s419_s26 }
  0x4c   : > { %623 = dma.done.wait (%p711_p6), %s206_s27, 128  }
  0x4d   : > { %625 = vsyncadd (%p711_p6), %s206_s27, 4294967168  ;;  %s215_s21 = sand.u32 1, %s693_s16   ;;  %s219_s9 = scalar_lea.vmem [#allocation5], %s419_s26 }
  0x4e   : > { %s216_s28 = scalar_lea.sflag [#allocation6], %s215_s21 }
  0x4f   : > { %627 = dma.done.wait (%p711_p6), %s216_s28, 256  }
  0x50   : > { %629 = vsyncadd (%p711_p6), %s216_s28, 4294967040  ;;  %s422_s10 = sshll.u32 %s806_s1, 4  ;;  %s429_s25 = sshll.u32 %s693_s16, 4  ;;  %v263_v0 = vld [vmem:[%s209_s6] sm:$0xff]  ;;  %v264_v1 = vld [vmem:[%s219_s9] sm:$0xff] }
  0x51   : > { %s289_s4 = scalar_lea.hbm %s856_s3, %s429_s25  ;;  %s229_s30 = scalar_lea.vmem [#allocation7], %s419_s26  ;;  %v267_v4 = vsub.f32 %v264_v1, %v263_v0 }
  0x52   : > { %v265_v2 = vld [vmem:[%s229_s30] sm:$0xff]  ;;  %s262_s7 = scalar_lea.vmem [#allocation8], %s422_s10  ;;  %s292_s22 = sshll.u32 %s289_s4, 4  ;;  %s293_s22 = int_to_ptr.hbm [resolvable:$true] %s292_s22 }
  0x53   : > { %v266_v3 = vsub.f32 1.0, %v265_v2  ;;  %s290_s29 = sshll.u32 %s262_s7, 4  ;;  %s278_s16 = scalar_lea.sflag [#allocation4], %s806_s1  ;;  %s291_s29 = int_to_ptr.vmem [resolvable:$true] %s290_s29 }
  0x54   : > { %s592_s5 = sshra.s32 %s293_s22, 4  ;;  %s598_s26 = scalar_lea.hbm %s856_s3, 32  ;;  %s593_s5 = int_to_ptr.hbm [resolvable:$true] %s592_s5 }
  0x55   : > { %v268_v5 = vmul.f32 %v267_v4, %v266_v3  ;;  %423 = vst [vmem:[%s262_s7 + $0x8] sm:$0xff] %v266_v3  ;;  %s594_s11 = scalar_lea.hbm %s593_s5, 16  ;;  %p599_p3 = scmp.lt.s32.totalorder %s593_s5, %s856_s3 }
  0x56   : > { %p595_p6 = scmp.ne.s32.totalorder %s593_s5, %s594_s11  ;;  %p600_p4 = scmp.lt.s32.totalorder %s598_s26, %s594_s11 }
  0x57   : > { %v269_v6 = vand.u32 2147483647, %v268_v5 }
  0x58   : > { %p596_p13 = pnand %p595_p6, %p718_p11  ;;  %p601_p5 = por %p600_p4, %p599_p3 }
  0x59   : > { %274 = vst [vmem:[%s262_s7] sm:$0xff] %v269_v6 }
  0x5a   : > { %p597_p2 = pneg %p596_p13 }
  0x5c   : > { %p602_p7 = pnand %p601_p5, %p597_p2 }
  0x5e   : > { %605 = shalt.err (!%p602_p7)
}
  0x5f   : > { %s650_s1 = smov 128   ;;  %s651_s21 = smov 8  }
  0x60   : > { %436 = dma.vmem_to_hbm [thread:$0]  (%p718_p11), %s291_s29, 256, %s293_s22, %s278_s16, %s650_s1, %s650_s1, %s651_s21  }
  0x61 PF: > { %s307_s28 = sand.u32 1, %s636_s12   ;;  %p449_p0 = pnand %p411_p9, %p722_p12 }
  0x62   : > { %s308_s9 = scalar_lea.sflag [#allocation4], %s307_s28 }
  0x63   : > { %p450_p8 = pneg %p449_p0 }
  0x65   : > { %631 = dma.done.wait (%p450_p8), %s308_s9, 256  }
  0x66   : > { %633 = vsyncadd (%p450_p8), %s308_s9, 4294967040  ;;  %s865_s10 = sld [smem:[#allocation12_spill]]  ;;  %p19_p10 = scmp.ge.s32.totalorder %s697_s18, 4  }
  0x67   : > { %s866_s12 = smov %s640_s13  ;;  %s867_s13 = smov %s644_s14 }
  0x68   : > { %s869_s15 = smov %s697_s18  ;;  %21 = sbr.rel (!%p19_p10) target bundleno = 9 (0x9), region = 102 }
  0x6c   : > { %s868_s14 = smov %s865_s10 }
  0x6d   :  { %314 = vsyncpa [#allocation3], 1 }
  0x6e   :  { %316 = vsyncpa [#allocation3 + $0x1], 1 }
  0x6f   :  { %317 = vsyncpa [#allocation6], 1 }
  0x70   :  { %319 = vsyncpa [#allocation6 + $0x1], 1 }
  0x71   :  { %320 = vsyncpa [#allocation4], 1 }
  0x72   :  { %322 = vsyncpa [#allocation4 + $0x1], 1 }

</bundles_post_ra>
